<compile_context>
chip_gen: v7x
topology: tpu7x:2x2x1
jax: 0.10.0
libtpu: 0.0.40
codegen_flags: <defaults>
</compile_context>

<pallas_src>
import jax
import jax.numpy as jnp
from jax import lax
from jax.experimental import pallas as pl
from jax.experimental.pallas import tpu as pltpu

_LANE = 128       # vreg lane width
_SUBLANE = 8      # vreg sublane count (f32)
_MAX_TB = 2048    # batch tile cap: multiple of 128; VMEM stays tiny, comfortably under
                  # the 32 MiB default scoped limit even on v7x (64 MiB physical VMEM)


def _round_up(x, m):
    return ((x + m - 1) // m) * m


def _default_num_tensorcores():
    """v7x exposes 2 TensorCores per chip; v5e/v6e expose 1."""
    try:
        kind = jax.devices()[0].device_kind.lower()
    except Exception:
        return 1
    return 2 if "v7" in kind else 1


def _choose_tiling(B, num_cores):
    """Pick (batch_tile, padded_batch). Tile is always a multiple of 128."""
    b128 = _round_up(max(B, 1), _LANE)
    if num_cores >= 2 and b128 >= 2 * _LANE:
        # v7x: split into at least num_cores grid steps so the "parallel" axis
        # maps onto both TensorCores.
        tb = min(_round_up(-(-b128 // num_cores), _LANE), _MAX_TB)
    else:
        # single-TC parts: one fat tile when it fits -> zero per-step overhead.
        tb = min(b128, _MAX_TB)
    b_pad = _round_up(B, tb)
    return tb, b_pad


def _reward_mlp_kernel(s_ref, a_ref, w1s_ref, w1a_ref, b1_ref,
                       w2_ref, b2_ref, w3t_ref, b3_ref, out_ref):
    # bf16 MXU path, f32 accumulation / bias / ReLU.
    s = s_ref[...].astype(jnp.bfloat16)
    a = a_ref[...].astype(jnp.bfloat16)

    # Fused concat: h1 = state @ w1_s + action @ w1_a + b1
    h1 = (jnp.dot(s, w1s_ref[...], preferred_element_type=jnp.float32)
          + jnp.dot(a, w1a_ref[...], preferred_element_type=jnp.float32)
          + b1_ref[...])
    h1 = jnp.maximum(h1, 0.0).astype(jnp.bfloat16)

    h2 = jnp.dot(h1, w2_ref[...], preferred_element_type=jnp.float32) + b2_ref[...]
    h2 = jnp.maximum(h2, 0.0).astype(jnp.bfloat16)

    # Lane-dense epilogue: out_t[j, b] = sum_k w3t[j, k] * h2[b, k]  -> (8, TB)
    out_t = lax.dot_general(
        w3t_ref[...], h2,
        dimension_numbers=(((1,), (1,)), ((), ())),
        preferred_element_type=jnp.float32,
    ) + b3_ref[...]
    out_ref[...] = out_t.astype(out_ref.dtype)


def prepare_params(params, state_dim, action_dim):
    """One-time transform of PyTorch-layout params into the kernel's layout:
    split w1 across state/action, zero-pad hidden dims to 128 lanes, cast the
    matmul weights to bf16, and pre-transpose/pad w3 so the kernel writes a
    lane-dense (8, B) output. Biases stay f32."""
    w1, b1 = params["w1"], params["b1"]   # (S+A, H0), (1, H0)
    w2, b2 = params["w2"], params["b2"]   # (H0, H1),  (1, H1)
    w3, b3 = params["w3"], params["b3"]   # (H1, 2),   (1, 2)
    H0, H1 = w1.shape[1], w2.shape[1]
    H0p = _round_up(max(H0, _LANE), _LANE)
    H1p = _round_up(max(H1, _LANE), _LANE)

    def pad_to(x, shape):
        return jnp.pad(x, [(0, t - s) for s, t in zip(x.shape, shape)])

    bf16 = jnp.bfloat16
    return dict(
        w1_s=pad_to(w1[:state_dim, :], (state_dim, H0p)).astype(bf16),
        w1_a=pad_to(w1[state_dim:, :], (action_dim, H0p)).astype(bf16),
        b1=pad_to(b1, (1, H0p)).astype(jnp.float32),
        w2=pad_to(w2, (H0p, H1p)).astype(bf16),
        b2=pad_to(b2, (1, H1p)).astype(jnp.float32),
        w3t=pad_to(w3.T, (_SUBLANE, H1p)).astype(bf16),   # (8, H1p); rows 2..7 zero
        b3=pad_to(b3.T, (_SUBLANE, 1)).astype(jnp.float32),
    )


def reward_model_forward(state, action, prepared, num_cores=None):
    """Pallas forward for RewardModel. Returns (mean, log_std), each (B, 1)."""
    B, S = state.shape
    A = action.shape[1]
    H0p = prepared["w1_s"].shape[1]
    H1p = prepared["w2"].shape[1]

    if num_cores is None:
        num_cores = _default_num_tensorcores()
    tb, b_pad = _choose_tiling(B, num_cores)
    if b_pad != B:
        state = jnp.pad(state, ((0, b_pad - B), (0, 0)))
        action = jnp.pad(action, ((0, b_pad - B), (0, 0)))
    grid = (b_pad // tb,)

    batch_spec = lambda ncols: pl.BlockSpec((tb, ncols), lambda i: (i, 0))
    const_spec = lambda a: pl.BlockSpec(a.shape, lambda i: (0, 0))

    flops = 2 * b_pad * (S * H0p + A * H0p + H0p * H1p + H1p * _SUBLANE)
    bytes_accessed = (
        4 * b_pad * (S + A)                     # f32 inputs
        + 2 * (S * H0p + A * H0p)               # bf16 fc1 weights
        + 4 * H0p                               # f32 b1
        + 2 * H0p * H1p + 4 * H1p               # fc2
        + 2 * _SUBLANE * H1p + 4 * _SUBLANE     # fc3
        + 4 * _SUBLANE * b_pad)                 # f32 output

    out_t = pl.pallas_call(
        _reward_mlp_kernel,
        out_shape=jax.ShapeDtypeStruct((_SUBLANE, b_pad), jnp.float32),
        grid=grid,
        in_specs=[
            batch_spec(S),                      # state tile streams
            batch_spec(A),                      # action tile streams
            const_spec(prepared["w1_s"]),       # weights stay VMEM-resident
            const_spec(prepared["w1_a"]),
            const_spec(prepared["b1"]),
            const_spec(prepared["w2"]),
            const_spec(prepared["b2"]),
            const_spec(prepared["w3t"]),
            const_spec(prepared["b3"]),
        ],
        out_specs=pl.BlockSpec((_SUBLANE, tb), lambda i: (0, i)),
        compiler_params=pltpu.CompilerParams(
            dimension_semantics=("parallel",)),  # shards batch tiles across TCs on v7x
        cost_estimate=pl.CostEstimate(
            flops=flops, transcendentals=0, bytes_accessed=bytes_accessed),
    )(state, action, prepared["w1_s"], prepared["w1_a"], prepared["b1"],
      prepared["w2"], prepared["b2"], prepared["w3t"], prepared["b3"])

    mean = out_t[0, :B].reshape(B, 1)
    log_std = out_t[1, :B].reshape(B, 1)
    return mean, log_std


def init_params(key, state_dim, action_dim, hidden_dims):
    """Deterministic synthetic init (PyTorch-Linear-like uniform fan-in bound).
    Weights stored as (in_features, out_features), biases as (1, out_features)."""
    dims_in = [state_dim + action_dim, hidden_dims[0], hidden_dims[1]]
    dims_out = [hidden_dims[0], hidden_dims[1], 2]
    params = {}
    for i, (din, dout) in enumerate(zip(dims_in, dims_out), start=1):
        key, kw, kb = jax.random.split(key, 3)
        bound = 1.0 / jnp.sqrt(din)
        params[f"w{i}"] = jax.random.uniform(
            kw, (din, dout), jnp.float32, minval=-bound, maxval=bound)
        params[f"b{i}"] = jax.random.uniform(
            kb, (1, dout), jnp.float32, minval=-bound, maxval=bound)
    return params


def _ref_forward(state, action, params):
    x = jnp.concatenate([state, action], axis=-1)
    h1 = jnp.maximum(x @ params["w1"] + params["b1"], 0.0)
    h2 = jnp.maximum(h1 @ params["w2"] + params["b2"], 0.0)
    out = h2 @ params["w3"] + params["b3"]
    return out[:, 0:1], out[:, 1:2]


if __name__ == "__main__":
    state_dim = 12
    action_dim = 4
    hidden_dims = (32, 32)

    key = jax.random.PRNGKey(0)
    key, kp = jax.random.split(key)
    params = init_params(kp, state_dim, action_dim, hidden_dims)
    prepared = prepare_params(params, state_dim, action_dim)

    # --- small-batch check (single grid step on every generation) ---
    batch = 8
    key, ks, ka = jax.random.split(key, 3)
    state = jax.random.normal(ks, (batch, state_dim), jnp.float32)
    action = jax.random.normal(ka, (batch, action_dim), jnp.float32)

    mean, log_std = reward_model_forward(state, action, prepared)
    jax.block_until_ready((mean, log_std))

    ref_mean, ref_log_std = _ref_forward(state, action, params)
    assert mean.shape == (batch, 1) and log_std.shape == (batch, 1)
    # bf16 MXU path -> loosened tolerance vs the f32 reference.
    assert jnp.allclose(mean, ref_mean, atol=5e-2, rtol=5e-2)
    assert jnp.allclose(log_std, ref_log_std, atol=5e-2, rtol=5e-2)

    # --- multi-tile / padded-batch check (force the 2-way v7x-style split) ---
    batch2 = 300
    key, ks2, ka2 = jax.random.split(key, 3)
    state2 = jax.random.normal(ks2, (batch2, state_dim), jnp.float32)
    action2 = jax.random.normal(ka2, (batch2, action_dim), jnp.float32)

    mean2, log_std2 = reward_model_forward(state2, action2, prepared, num_cores=2)
    jax.block_until_ready((mean2, log_std2))

    ref_mean2, ref_log_std2 = _ref_forward(state2, action2, params)
    assert mean2.shape == (batch2, 1) and log_std2.shape == (batch2, 1)
    assert jnp.allclose(mean2, ref_mean2, atol=5e-2, rtol=5e-2)
    assert jnp.allclose(log_std2, ref_log_std2, atol=5e-2, rtol=5e-2)

    print("KERNEL_OK")
</pallas_src>

<mosaic_0001>
module attributes {stable_mosaic.version = 11 : i64} {
  func.func @_reward_mlp_kernel(%arg0: i32, %arg1: memref<128x12xf32, #tpu.memory_space<vmem>>, %arg2: memref<128x4xf32, #tpu.memory_space<vmem>>, %arg3: memref<12x128xbf16, #tpu.memory_space<vmem>>, %arg4: memref<4x128xbf16, #tpu.memory_space<vmem>>, %arg5: memref<1x128xf32, #tpu.memory_space<vmem>>, %arg6: memref<128x128xbf16, #tpu.memory_space<vmem>>, %arg7: memref<1x128xf32, #tpu.memory_space<vmem>>, %arg8: memref<8x128xbf16, #tpu.memory_space<vmem>>, %arg9: memref<8x1xf32, #tpu.memory_space<vmem>>, %arg10: memref<8x128xf32, #tpu.memory_space<vmem>>) attributes {dimension_semantics = [#tpu.dimension_semantics<parallel>], iteration_bounds = array<i64: 1>, scalar_prefetch = 0 : i64, scratch_operands = 0 : i64, tpu.core_type = #tpu.core_type<tc>, window_params = [{transform_indices = @transform_0, window_bounds = array<i64: 128, 12>}, {transform_indices = @transform_1, window_bounds = array<i64: 128, 4>}, {pipeline_mode = #tpu.pipeline_mode<synchronous>, transform_indices = @transform_2, window_bounds = array<i64: 12, 128>}, {pipeline_mode = #tpu.pipeline_mode<synchronous>, transform_indices = @transform_3, window_bounds = array<i64: 4, 128>}, {pipeline_mode = #tpu.pipeline_mode<synchronous>, transform_indices = @transform_4, window_bounds = array<i64: 1, 128>}, {pipeline_mode = #tpu.pipeline_mode<synchronous>, transform_indices = @transform_5, window_bounds = array<i64: 128, 128>}, {pipeline_mode = #tpu.pipeline_mode<synchronous>, transform_indices = @transform_6, window_bounds = array<i64: 1, 128>}, {pipeline_mode = #tpu.pipeline_mode<synchronous>, transform_indices = @transform_7, window_bounds = array<i64: 8, 128>}, {pipeline_mode = #tpu.pipeline_mode<synchronous>, transform_indices = @transform_8, window_bounds = array<i64: 8, 1>}, {transform_indices = @transform_9, window_bounds = array<i64: 8, 128>}]} {
    %c0 = arith.constant 0 : index
    %c0_0 = arith.constant 0 : index
    %0 = vector.load %arg1[%c0, %c0_0] : memref<128x12xf32, #tpu.memory_space<vmem>>, vector<128x12xf32>
    %1 = arith.truncf %0 : vector<128x12xf32> to vector<128x12xbf16>
    %c0_1 = arith.constant 0 : index
    %c0_2 = arith.constant 0 : index
    %2 = vector.load %arg2[%c0_1, %c0_2] : memref<128x4xf32, #tpu.memory_space<vmem>>, vector<128x4xf32>
    %3 = arith.truncf %2 : vector<128x4xf32> to vector<128x4xbf16>
    %c0_3 = arith.constant 0 : index
    %c0_4 = arith.constant 0 : index
    %4 = vector.load %arg3[%c0_3, %c0_4] : memref<12x128xbf16, #tpu.memory_space<vmem>>, vector<12x128xbf16>
    %cst = arith.constant dense<0.000000e+00> : vector<128x128xf32>
    %5 = tpu.matmul %1, %4, %cst {dimension_numbers = #tpu.dot_dimension_numbers<[1], [0], [0], [1], [0, 0, 1, 1], [], []>} : vector<128x12xbf16>, vector<12x128xbf16>, vector<128x128xf32> -> vector<128x128xf32>
    %c0_5 = arith.constant 0 : index
    %c0_6 = arith.constant 0 : index
    %6 = vector.load %arg4[%c0_5, %c0_6] : memref<4x128xbf16, #tpu.memory_space<vmem>>, vector<4x128xbf16>
    %cst_7 = arith.constant dense<0.000000e+00> : vector<128x128xf32>
    %7 = tpu.matmul %3, %6, %cst_7 {dimension_numbers = #tpu.dot_dimension_numbers<[1], [0], [0], [1], [0, 0, 1, 1], [], []>} : vector<128x4xbf16>, vector<4x128xbf16>, vector<128x128xf32> -> vector<128x128xf32>
    %8 = arith.addf %5, %7 : vector<128x128xf32>
    %c0_8 = arith.constant 0 : index
    %c0_9 = arith.constant 0 : index
    %9 = vector.load %arg5[%c0_8, %c0_9] : memref<1x128xf32, #tpu.memory_space<vmem>>, vector<1x128xf32>
    %10 = vector.broadcast %9 : vector<1x128xf32> to vector<128x128xf32>
    %11 = arith.addf %8, %10 : vector<128x128xf32>
    %cst_10 = arith.constant 0.000000e+00 : f32
    %12 = vector.broadcast %cst_10 : f32 to vector<128x128xf32>
    %13 = arith.maximumf %11, %12 : vector<128x128xf32>
    %14 = arith.truncf %13 : vector<128x128xf32> to vector<128x128xbf16>
    %c0_11 = arith.constant 0 : index
    %c0_12 = arith.constant 0 : index
    %15 = vector.load %arg6[%c0_11, %c0_12] : memref<128x128xbf16, #tpu.memory_space<vmem>>, vector<128x128xbf16>
    %cst_13 = arith.constant dense<0.000000e+00> : vector<128x128xf32>
    %16 = tpu.matmul %14, %15, %cst_13 {dimension_numbers = #tpu.dot_dimension_numbers<[1], [0], [0], [1], [0, 0, 1, 1], [], []>} : vector<128x128xbf16>, vector<128x128xbf16>, vector<128x128xf32> -> vector<128x128xf32>
    %c0_14 = arith.constant 0 : index
    %c0_15 = arith.constant 0 : index
    %17 = vector.load %arg7[%c0_14, %c0_15] : memref<1x128xf32, #tpu.memory_space<vmem>>, vector<1x128xf32>
    %18 = vector.broadcast %17 : vector<1x128xf32> to vector<128x128xf32>
    %19 = arith.addf %16, %18 : vector<128x128xf32>
    %cst_16 = arith.constant 0.000000e+00 : f32
    %20 = vector.broadcast %cst_16 : f32 to vector<128x128xf32>
    %21 = arith.maximumf %19, %20 : vector<128x128xf32>
    %22 = arith.truncf %21 : vector<128x128xf32> to vector<128x128xbf16>
    %c0_17 = arith.constant 0 : index
    %c0_18 = arith.constant 0 : index
    %23 = vector.load %arg8[%c0_17, %c0_18] : memref<8x128xbf16, #tpu.memory_space<vmem>>, vector<8x128xbf16>
    %cst_19 = arith.constant dense<0.000000e+00> : vector<8x128xf32>
    %24 = tpu.matmul %23, %22, %cst_19 {dimension_numbers = #tpu.dot_dimension_numbers<[1], [1], [0], [0], [0, 0, 1, 0], [], []>} : vector<8x128xbf16>, vector<128x128xbf16>, vector<8x128xf32> -> vector<8x128xf32>
    %c0_20 = arith.constant 0 : index
    %c0_21 = arith.constant 0 : index
    %25 = vector.load %arg9[%c0_20, %c0_21] : memref<8x1xf32, #tpu.memory_space<vmem>>, vector<8x1xf32>
    %26 = vector.broadcast %25 : vector<8x1xf32> to vector<8x128xf32>
    %27 = arith.addf %24, %26 : vector<8x128xf32>
    %c0_22 = arith.constant 0 : index
    %c0_23 = arith.constant 0 : index
    %28 = vector.load %arg10[%c0_22, %c0_23] : memref<8x128xf32, #tpu.memory_space<vmem>>, vector<8x128xf32>
    tpu.vector_store %arg10[%c0_22, %c0_23], %27 {strides = array<i32>} : memref<8x128xf32, #tpu.memory_space<vmem>>, vector<8x128xf32>,
    return
  }
  func.func @transform_0(%arg0: i32) -> (i32, i32) {
    %c0_i32 = arith.constant 0 : i32
    %c0_i32_0 = arith.constant 0 : i32
    return %arg0, %c0_i32 : i32, i32
  }
  func.func @transform_1(%arg0: i32) -> (i32, i32) {
    %c0_i32 = arith.constant 0 : i32
    %c0_i32_0 = arith.constant 0 : i32
    return %arg0, %c0_i32 : i32, i32
  }
  func.func @transform_2(%arg0: i32) -> (i32, i32) {
    %c0_i32 = arith.constant 0 : i32
    %c0_i32_0 = arith.constant 0 : i32
    %c0_i32_1 = arith.constant 0 : i32
    return %c0_i32, %c0_i32_0 : i32, i32
  }
  func.func @transform_3(%arg0: i32) -> (i32, i32) {
    %c0_i32 = arith.constant 0 : i32
    %c0_i32_0 = arith.constant 0 : i32
    %c0_i32_1 = arith.constant 0 : i32
    return %c0_i32, %c0_i32_0 : i32, i32
  }
  func.func @transform_4(%arg0: i32) -> (i32, i32) {
    %c0_i32 = arith.constant 0 : i32
    %c0_i32_0 = arith.constant 0 : i32
    %c0_i32_1 = arith.constant 0 : i32
    return %c0_i32, %c0_i32_0 : i32, i32
  }
  func.func @transform_5(%arg0: i32) -> (i32, i32) {
    %c0_i32 = arith.constant 0 : i32
    %c0_i32_0 = arith.constant 0 : i32
    %c0_i32_1 = arith.constant 0 : i32
    return %c0_i32, %c0_i32_0 : i32, i32
  }
  func.func @transform_6(%arg0: i32) -> (i32, i32) {
    %c0_i32 = arith.constant 0 : i32
    %c0_i32_0 = arith.constant 0 : i32
    %c0_i32_1 = arith.constant 0 : i32
    return %c0_i32, %c0_i32_0 : i32, i32
  }
  func.func @transform_7(%arg0: i32) -> (i32, i32) {
    %c0_i32 = arith.constant 0 : i32
    %c0_i32_0 = arith.constant 0 : i32
    %c0_i32_1 = arith.constant 0 : i32
    return %c0_i32, %c0_i32_0 : i32, i32
  }
  func.func @transform_8(%arg0: i32) -> (i32, i32) {
    %c0_i32 = arith.constant 0 : i32
    %c0_i32_0 = arith.constant 0 : i32
    %c0_i32_1 = arith.constant 0 : i32
    return %c0_i32, %c0_i32_0 : i32, i32
  }
  func.func @transform_9(%arg0: i32) -> (i32, i32) {
    %c0_i32 = arith.constant 0 : i32
    %c0_i32_0 = arith.constant 0 : i32
    return %c0_i32, %arg0 : i32, i32
  }
}

</mosaic_0001>

<bundles_post_ra>
// kernel: tpu_custom_call.1
= control target key start
LH: loop header
LB: loop body
LE: loop exit
PB: predicated region body
PF: predicated region fallthrough
CT: control target
= control target key end

     0   :  { %vm110_vm0 = vcmask 1041408   ;;  %vm241_vm1 = vcmask 1045504   ;;  %vm85_vm2 = vcmask 31744   ;;  %vm216_vm3 = vcmask 97280   ;;  %s1104_s0 = inlined_call_operand.vmem [shape: f32[128,12], index: 0, kind: input, shape index: {}]   ;;  %s1105_s1 = inlined_call_operand.vmem [shape: f32[128,4], index: 1, kind: input, shape index: {}]   ;;  %s1106_s2 = inlined_call_operand.vmem [shape: bf16[12,128], index: 2, kind: input, shape index: {}]   ;;  %s1107_s3 = inlined_call_operand.vmem [shape: bf16[4,128], index: 3, kind: input, shape index: {}]   ;;  %s1108_s4 = inlined_call_operand.vmem [shape: f32[1,128], index: 4, kind: input, shape index: {}]   ;;  %s1109_s5 = inlined_call_operand.vmem [shape: bf16[128,128], index: 5, kind: input, shape index: {}]   ;;  %s1110_s6 = inlined_call_operand.vmem [shape: f32[1,128], index: 6, kind: input, shape index: {}]   ;;  %s1111_s7 = inlined_call_operand.vmem [shape: bf16[8,128], index: 7, kind: input, shape index: {}]   ;;  %s1112_s8 = inlined_call_operand.vmem [shape: f32[8,1], index: 8, kind: input, shape index: {}]   ;;  %s1113_s9 = inlined_call_operand.hbm [shape: f32[8,128], index: 9, kind: output, shape index: {}]  }
   0x1   :  { %v84_v0 = vld [vmem:[%s1107_s3] sm:$0x3]  ;;  %v59_v4 = vld [vmem:[%s1105_s1 + $0x8] sm:$0xff]  ;;  %v60_v5 = vld [vmem:[%s1105_s1 + $0x10] sm:$0xff] }
   0x2   :  { %817 = vmatprep.subr.msk.bf16.mxu1 %vm110_vm0, %v84_v0  ;;  %v112_v1 = vsel %vm110_vm0, %v84_v0, 0  ;;  %v824_v2 = vld [vmem:[%s1106_s2] sm:$0x3f]   ;;  %v61_v6 = vld [vmem:[%s1105_s1 + $0x18] sm:$0xff]  ;;  %v35_v11 = vld [vmem:[%s1104_s0 + $0x8] sm:$0xff] }
   0x3   :  { %v58_v3 = vld [vmem:[%s1105_s1] sm:$0xff]  ;;  %714 = vmatpush3.bf16.msra.mxu1 %v112_v1  ;;  %818 = vmatprep.subr.msk.bf16.mxu0 %vm241_vm1, %v824_v2  ;;  %v243_v8 = vsel %vm241_vm1, %v824_v2, 0  ;;  %v75_v9 = vpack.c.bf16 %v61_v6, %v60_v5  ;;  %v36_v12 = vld [vmem:[%s1104_s0 + $0x10] sm:$0xff]  ;;  %v37_v14 = vld [vmem:[%s1104_s0 + $0x18] sm:$0xff] }
   0x4   :  { %v74_v7 = vpack.c.bf16 %v59_v4, %v58_v3  ;;  %v34_v10 = vld [vmem:[%s1104_s0] sm:$0xff]  ;;  %732 = vmatpush3.bf16.msra.mxu0 %v243_v8  ;;  %v63_v16 = vld [vmem:[%s1105_s1 + $0x28] sm:$0xff]  ;;  %v51_v17 = vpack.c.bf16 %v37_v14, %v36_v12  ;;  %v64_v22 = vld [vmem:[%s1105_s1 + $0x30] sm:$0xff] }
   0x5   :  { %v50_v13 = vpack.c.bf16 %v35_v11, %v34_v10  ;;  %v62_v15 = vld [vmem:[%s1105_s1 + $0x20] sm:$0xff]  ;;  %v39_v20 = vld [vmem:[%s1104_s0 + $0x28] sm:$0xff]  ;;  %v65_v23 = vld [vmem:[%s1105_s1 + $0x38] sm:$0xff] }
   0x6   :  { %715 = vmatprep.mubr.msk.bf16.mxu1 %vm85_vm2, %v74_v7  ;;  %v76_v18 = vpack.c.bf16 %v63_v16, %v62_v15  ;;  %v38_v19 = vld [vmem:[%s1104_s0 + $0x20] sm:$0xff]  ;;  %v40_v24 = vld [vmem:[%s1104_s0 + $0x30] sm:$0xff]  ;;  %v41_v25 = vld [vmem:[%s1104_s0 + $0x38] sm:$0xff]  ;;  %v77_v30 = vpack.c.bf16 %v65_v23, %v64_v22 }
   0x7   :  { %716 = vmatmul.mubr.msk.bf16.vlgmr.msra.gmra.mrb[0].mxu1 %vm85_vm2, %v75_v9  ;;  %733 = vmatprep.mubr.msk.bf16.mxu0 %vm216_vm3, %v50_v13  ;;  %v52_v21 = vpack.c.bf16 %v39_v20, %v38_v19  ;;  %v66_v26 = vld [vmem:[%s1105_s1 + $0x40] sm:$0xff]  ;;  %v67_v27 = vld [vmem:[%s1105_s1 + $0x48] sm:$0xff]  ;;  %v53_v31 = vpack.c.bf16 %v41_v25, %v40_v24  ;;  %v68_v34 = vld [vmem:[%s1105_s1 + $0x50] sm:$0xff] }
   0x8   :  { %734 = vmatmul.mubr.msk.bf16.vlgmr.msra.gmra.mrb[0].mxu0 %vm216_vm3, %v51_v17  ;;  %719 = vmatprep.mubr.msk.bf16.mxu1 %vm85_vm2, %v76_v18  ;;  %v42_v28 = vld [vmem:[%s1104_s0 + $0x40] sm:$0xff]  ;;  %v43_v29 = vld [vmem:[%s1104_s0 + $0x48] sm:$0xff]  ;;  %v78_v32 = vpack.c.bf16 %v67_v27, %v66_v26  ;;  %v69_v35 = vld [vmem:[%s1105_s1 + $0x58] sm:$0xff] }
   0x9   :  { %737 = vmatprep.mubr.msk.bf16.mxu0 %vm216_vm3, %v52_v21  ;;  %v54_v33 = vpack.c.bf16 %v43_v29, %v42_v28  ;;  %v825_v36 = vld [vmem:[%s1109_s5] sm:$0xff]   ;;  %v44_v37 = vld [vmem:[%s1104_s0 + $0x50] sm:$0xff]  ;;  %v45_v38 = vld [vmem:[%s1104_s0 + $0x58] sm:$0xff]  ;;  %v79_v45 = vpack.c.bf16 %v69_v35, %v68_v34 }
   0xa   :  { %v70_v39 = vld [vmem:[%s1105_s1 + $0x60] sm:$0xff]  ;;  %v71_v40 = vld [vmem:[%s1105_s1 + $0x68] sm:$0xff]  ;;  %749 = vmatprep.subr.bf16.mxu0 %v825_v36  ;;  %v827_v44 = vld [vmem:[%s1109_s5 + $0x10] sm:$0xff]   ;;  %v55_v46 = vpack.c.bf16 %v45_v38, %v44_v37 }
   0xb   :  { %v826_v41 = vld [vmem:[%s1109_s5 + $0x8] sm:$0xff]   ;;  %v46_v42 = vld [vmem:[%s1104_s0 + $0x60] sm:$0xff]  ;;  %750 = vmatpush3.bf16.msra.mxu0 %v825_v36  ;;  %v80_v47 = vpack.c.bf16 %v71_v40, %v70_v39 }
   0xc   :  { %v47_v43 = vld [vmem:[%s1104_s0 + $0x68] sm:$0xff]  ;;  %751 = vmatprep.subr.bf16.mxu0 %v826_v41 }
   0xf   :  { %720 = vmatmul.mubr.msk.bf16.gmra.mrb[4].mxu1 %vm85_vm2, %v77_v30 }
  0x10   :  { %738 = vmatmul.mubr.msk.bf16.gmra.mrb[4].mxu0 %vm216_vm3, %v53_v31  ;;  %723 = vmatprep.mubr.msk.bf16.mxu1 %vm85_vm2, %v78_v32 }
  0x11   :  { %741 = vmatprep.mubr.msk.bf16.mxu0 %vm216_vm3, %v54_v33 }
  0x12   :  { %14 = vsyncpa [#allocation3], 0  ;;  %v56_v48 = vpack.c.bf16 %v47_v43, %v46_v42  ;;  %752 = vmatpush3.bf16.msra.mxu0 %v826_v41  ;;  %v828_v49 = vld [vmem:[%s1109_s5 + $0x18] sm:$0xff]   ;;  %v72_v50 = vld [vmem:[%s1105_s1 + $0x70] sm:$0xff]  ;;  %vm858_vm4 = vmmov 0   ;;  %s860_s24 = smov [#allocation2]  }
  0x13   :  { %753 = vmatprep.subr.bf16.mxu0 %v827_v44  ;;  %v73_v51 = vld [vmem:[%s1105_s1 + $0x78] sm:$0xff]  ;;  %v48_v52 = vld [vmem:[%s1104_s0 + $0x70] sm:$0xff]  ;;  %v829_v55 = vld [vmem:[%s1109_s5 + $0x20] sm:$0xff]   ;;  %s635_s25 = sshll.u32 %s860_s24, 4  ;;  %s636_s25 = int_to_ptr.vmem [resolvable:$true] %s635_s25 }
  0x14   :  { %v49_v53 = vld [vmem:[%s1104_s0 + $0x78] sm:$0xff]  ;;  %v81_v54 = vpack.c.bf16 %v73_v51, %v72_v50  ;;  %v830_v57 = vld [vmem:[%s1109_s5 + $0x28] sm:$0xff]   ;;  %v831_v58 = vld [vmem:[%s1109_s5 + $0x30] sm:$0xff]   ;;  %s833_s26 = scalar_lea.vmem %s636_s25, 128  ;;  %p838_p1 = scmp.lt.s32.totalorder %s636_s25, %s636_s25 }
  0x15   :  { %v57_v56 = vpack.c.bf16 %v49_v53, %v48_v52  ;;  %v832_v59 = vld [vmem:[%s1109_s5 + $0x38] sm:$0xff]   ;;  %v1056_v63 = vld [vmem:[%s1108_s4] ss:$0 sm:$0xff]  ;;  %p834_p0 = scmp.ne.s32.totalorder %s636_s25, %s833_s26  ;;  %p839_p2 = scmp.lt.s32.totalorder %s833_s26, %s833_s26 }
  0x16   :  { %754 = vmatpush3.bf16.msra.mxu0 %v827_v44 }
  0x17   :  { %724 = vmatmul.mubr.msk.bf16.gmra.mrb[8].mxu1 %vm85_vm2, %v79_v45  ;;  %755 = vmatprep.subr.bf16.mxu0 %v828_v49  ;;  %p840_p3 = por %p839_p2, %p838_p1 }
  0x18   :  { %742 = vmatmul.mubr.msk.bf16.gmra.mrb[8].mxu0 %vm216_vm3, %v55_v46  ;;  %727 = vmatprep.mubr.msk.bf16.mxu1 %vm85_vm2, %v80_v47 }
  0x19   :  { %745 = vmatprep.mubr.msk.bf16.mxu0 %vm216_vm3, %v56_v48  ;;  %p841_p4 = pnand %p840_p3, %p834_p0 }
  0x1a   :  { %756 = vmatpush3.bf16.msra.mxu0 %v828_v49 }
  0x1b   :  { %757 = vmatprep.subr.bf16.mxu0 %v829_v55 }
  0x1e   :  { %758 = vmatpush3.bf16.msra.mxu0 %v829_v55 }
  0x1f   :  { %728 = vmatmul.mubr.msk.bf16.gmra.mrb[12].mxu1 %vm85_vm2, %v81_v54  ;;  %759 = vmatprep.subr.bf16.mxu0 %v830_v57 }
  0x20   :  { %746 = vmatmul.mubr.msk.bf16.gmra.mrb[12].mxu0 %vm216_vm3, %v57_v56 }
  0x22   :  { %760 = vmatpush3.bf16.msra.mxu0 %v830_v57 }
  0x23   :  { %761 = vmatprep.subr.bf16.mxu0 %v831_v58 }
  0x26   :  { %762 = vmatpush3.bf16.msra.mxu0 %v831_v58 }
  0x27   :  { %763 = vmatprep.subr.bf16.mxu0 %v832_v59 }
  0x2a   :  { %764 = vmatpush3.bf16.msra.mxu0 %v832_v59 }
  0xda   :  { %v717_v60 = vpop.f32.mrb[0].mxu1 }
  0xdb   :  { %v148_v61 = vpop.f32.mrb[1].mxu1  ;;  %v735_v62 = vpop.f32.mrb[0].mxu0 }
  0xdc   :  { %v718_v0 = vpop.f32.mrb[2].mxu1  ;;  %v288_v1 = vadd.f32 %v735_v62, %v717_v60  ;;  %v279_v2 = vpop.f32.mrb[1].mxu0 }
  0xdd   :  { %v151_v3 = vpop.f32.mrb[3].mxu1  ;;  %v280_v4 = vadd.f32 %v279_v2, %v148_v61  ;;  %v736_v5 = vpop.f32.mrb[2].mxu0 }
  0xde   :  { %v351_v6 = vadd.f32 %v1056_v63, %v288_v1  ;;  %v291_v7 = vadd.f32 %v736_v5, %v718_v0  ;;  %v282_v8 = vpop.f32.mrb[3].mxu0 }
  0xdf   :  { %v349_v9 = vadd.f32 %v1056_v63, %v280_v4  ;;  %v283_v10 = vadd.f32 %v282_v8, %v151_v3 }
  0xe0   :  { %v352_v11 = vadd.f32 %v1056_v63, %v291_v7  ;;  %v367_v13 = vmax.f32 %v351_v6, 0.0 }
  0xe1   :  { %v350_v12 = vadd.f32 %v1056_v63, %v283_v10  ;;  %v365_v16 = vmax.f32 %v349_v9, 0.0 }
  0xe2   :  { %v368_v14 = vmax.f32 %v352_v11, 0.0  ;;  %v721_v15 = vpop.f32.mrb[4].mxu1 }
  0xe3   :  { %v366_v17 = vmax.f32 %v350_v12, 0.0  ;;  %v739_v18 = vpop.f32.mrb[4].mxu0  ;;  %v164_v19 = vpop.f32.mrb[5].mxu1 }
  0xe4   :  { %v382_v20 = vpack.c.bf16 %v368_v14, %v367_v13  ;;  %v304_v21 = vadd.f32 %v739_v18, %v721_v15  ;;  %v295_v22 = vpop.f32.mrb[5].mxu0  ;;  %v722_v23 = vpop.f32.mrb[6].mxu1 }
  0xe5   :  { %v296_v24 = vadd.f32 %v295_v22, %v164_v19  ;;  %v740_v25 = vpop.f32.mrb[6].mxu0  ;;  %v167_v26 = vpop.f32.mrb[7].mxu1  ;;  %v381_v27 = vpack.c.bf16 %v366_v17, %v365_v16  ;;  %v857_v22 = vmov 0.0  }
  0xe6   :  { %v355_v28 = vadd.f32 %v1056_v63, %v304_v21  ;;  %v307_v29 = vadd.f32 %v740_v25, %v722_v23  ;;  %v298_v30 = vpop.f32.mrb[7].mxu0  ;;  %781 = vmatprep.subr.bf16.mxu1 %v857_v22  ;;  %797 = vmatprep.mubr.msk.bf16.mxu1 %vm858_vm4, %v857_v22  ;;  %v582_v23 = vld [vmem:[%s1112_s8] sm:$0xff] }
  0xe7   :  { %v353_v31 = vadd.f32 %v1056_v63, %v296_v24  ;;  %v299_v32 = vadd.f32 %v298_v30, %v167_v26  ;;  %765 = vmatprep.mubr.bf16.mxu0 %v381_v27  ;;  %v859_v24 = vmov 0  }
  0xe8   :  { %v371_v33 = vmax.f32 %v355_v28, 0.0  ;;  %v356_v34 = vadd.f32 %v1056_v63, %v307_v29  ;;  %766 = vmatmul.mubr.bf16.vlgmr.msra.gmra.mrb[16].mxu0 %v382_v20  ;;  %823 = vset.pattern.permute.xlu0 %v859_v24 }
  0xe9   :  { %v369_v35 = vmax.f32 %v353_v31, 0.0  ;;  %v354_v36 = vadd.f32 %v1056_v63, %v299_v32  ;;  %585 = vperm.xlu0 %823, %v582_v23  }
  0xea   :  { %v372_v37 = vmax.f32 %v356_v34, 0.0  ;;  %v725_v38 = vpop.f32.mrb[8].mxu1 }
  0xeb   :  { %v370_v39 = vmax.f32 %v354_v36, 0.0  ;;  %v743_v40 = vpop.f32.mrb[8].mxu0  ;;  %v180_v41 = vpop.f32.mrb[9].mxu1 }
  0xec   :  { %v384_v42 = vpack.c.bf16 %v372_v37, %v371_v33  ;;  %v320_v43 = vadd.f32 %v743_v40, %v725_v38  ;;  %v311_v44 = vpop.f32.mrb[9].mxu0  ;;  %v726_v45 = vpop.f32.mrb[10].mxu1 }
  0xed   :  { %v383_v46 = vpack.c.bf16 %v370_v39, %v369_v35  ;;  %v312_v47 = vadd.f32 %v311_v44, %v180_v41  ;;  %v744_v48 = vpop.f32.mrb[10].mxu0  ;;  %v183_v49 = vpop.f32.mrb[11].mxu1 }
  0xee   :  { %v359_v50 = vadd.f32 %v1056_v63, %v320_v43  ;;  %v323_v51 = vadd.f32 %v744_v48, %v726_v45  ;;  %v314_v52 = vpop.f32.mrb[11].mxu0 }
  0xef   :  { %769 = vmatprep.mubr.bf16.mxu0 %v383_v46  ;;  %v357_v53 = vadd.f32 %v1056_v63, %v312_v47  ;;  %v315_v54 = vadd.f32 %v314_v52, %v183_v49 }
  0xf0   :  { %770 = vmatmul.mubr.bf16.gmra.mrb[20].mxu0 %v384_v42  ;;  %v375_v55 = vmax.f32 %v359_v50, 0.0  ;;  %v360_v56 = vadd.f32 %v1056_v63, %v323_v51 }
  0xf1   :  { %v373_v57 = vmax.f32 %v357_v53, 0.0  ;;  %v358_v58 = vadd.f32 %v1056_v63, %v315_v54 }
  0xf2   :  { %v376_v59 = vmax.f32 %v360_v56, 0.0  ;;  %v729_v60 = vpop.f32.mrb[12].mxu1 }
  0xf3   :  { %v374_v61 = vmax.f32 %v358_v58, 0.0  ;;  %v747_v62 = vpop.f32.mrb[12].mxu0  ;;  %v196_v0 = vpop.f32.mrb[13].mxu1 }
  0xf4   :  { %v386_v1 = vpack.c.bf16 %v376_v59, %v375_v55  ;;  %v336_v2 = vadd.f32 %v747_v62, %v729_v60  ;;  %v327_v3 = vpop.f32.mrb[13].mxu0  ;;  %v730_v4 = vpop.f32.mrb[14].mxu1 }
  0xf5   :  { %v385_v5 = vpack.c.bf16 %v374_v61, %v373_v57  ;;  %v328_v6 = vadd.f32 %v327_v3, %v196_v0  ;;  %v748_v7 = vpop.f32.mrb[14].mxu0  ;;  %v199_v8 = vpop.f32.mrb[15].mxu1 }
  0xf6   :  { %v363_v9 = vadd.f32 %v1056_v63, %v336_v2  ;;  %v339_v10 = vadd.f32 %v748_v7, %v730_v4  ;;  %v330_v11 = vpop.f32.mrb[15].mxu0 }
  0xf7   :  { %773 = vmatprep.mubr.bf16.mxu0 %v385_v5  ;;  %v361_v12 = vadd.f32 %v1056_v63, %v328_v6  ;;  %v331_v13 = vadd.f32 %v330_v11, %v199_v8 }
  0xf8   :  { %774 = vmatmul.mubr.bf16.gmra.mrb[24].mxu0 %v386_v1  ;;  %v379_v14 = vmax.f32 %v363_v9, 0.0  ;;  %v364_v15 = vadd.f32 %v1056_v63, %v339_v10 }
  0xf9   :  { %v377_v16 = vmax.f32 %v361_v12, 0.0  ;;  %v362_v17 = vadd.f32 %v1056_v63, %v331_v13  ;;  %v661_v63 = vld [vmem:[%s1110_s6] ss:$0 sm:$0xff] }
  0xfa   :  { %v380_v18 = vmax.f32 %v364_v15, 0.0 }
  0xfb   :  { %v378_v19 = vmax.f32 %v362_v17, 0.0 }
  0xfc   :  { %v388_v20 = vpack.c.bf16 %v380_v18, %v379_v14  ;;  %v581_v18 = vld [vmem:[%s1111_s7] sm:$0xf] }
  0xfd   :  { %v387_v21 = vpack.c.bf16 %v378_v19, %v377_v16 }
  0xff   :  { %777 = vmatprep.mubr.bf16.mxu0 %v387_v21 }
 0x100   :  { %778 = vmatmul.mubr.bf16.gmra.mrb[28].mxu0 %v388_v20 }
 0x168   :  { %v586_v19 = vpop.permute.xlu0 %585 }
 0x1bb   :  { %v767_v25 = vpop.f32.mrb[16].mxu0 }
 0x1bc   :  { %v503_v26 = vadd.f32 %v767_v25, %v661_v63  ;;  %v494_v27 = vpop.f32.mrb[17].mxu0 }
 0x1bd   :  { %v495_v28 = vadd.f32 %v661_v63, %v494_v27  ;;  %v768_v29 = vpop.f32.mrb[18].mxu0 }
 0x1be   :  { %v506_v30 = vadd.f32 %v768_v29, %v661_v63  ;;  %v497_v31 = vpop.f32.mrb[19].mxu0  ;;  %v559_v33 = vmax.f32 %v503_v26, 0.0 }
 0x1bf   :  { %v498_v32 = vadd.f32 %v661_v63, %v497_v31  ;;  %v557_v35 = vmax.f32 %v495_v28, 0.0 }
 0x1c0   :  { %v560_v34 = vmax.f32 %v506_v30, 0.0 }
 0x1c1   :  { %v558_v36 = vmax.f32 %v498_v32, 0.0 }
 0x1c2   :  { %v574_v37 = vpack.c.bf16 %v560_v34, %v559_v33 }
 0x1c3   :  { %v573_v38 = vpack.c.bf16 %v558_v36, %v557_v35  ;;  %v771_v39 = vpop.f32.mrb[20].mxu0 }
 0x1c4   :  { %v519_v40 = vadd.f32 %v771_v39, %v661_v63  ;;  %v510_v41 = vpop.f32.mrb[21].mxu0 }
 0x1c5   :  { %v511_v42 = vadd.f32 %v661_v63, %v510_v41  ;;  %782 = vmatpush3.bf16.xpose.msra.mxu1 %v573_v38  ;;  %v772_v43 = vpop.f32.mrb[22].mxu0 }
 0x1c6   :  { %v563_v44 = vmax.f32 %v519_v40, 0.0  ;;  %v522_v45 = vadd.f32 %v772_v43, %v661_v63  ;;  %v513_v46 = vpop.f32.mrb[23].mxu0  ;;  %783 = vmatprep.subr.bf16.mxu1 %v857_v22 }
 0x1c7   :  { %v561_v47 = vmax.f32 %v511_v42, 0.0  ;;  %v514_v48 = vadd.f32 %v661_v63, %v513_v46 }
 0x1c8   :  { %v564_v49 = vmax.f32 %v522_v45, 0.0 }
 0x1c9   :  { %v562_v50 = vmax.f32 %v514_v48, 0.0 }
 0x1ca   :  { %v576_v51 = vpack.c.bf16 %v564_v49, %v563_v44 }
 0x1cb   :  { %v575_v52 = vpack.c.bf16 %v562_v50, %v561_v47  ;;  %v775_v53 = vpop.f32.mrb[24].mxu0 }
 0x1cc   :  { %v535_v54 = vadd.f32 %v775_v53, %v661_v63  ;;  %v526_v55 = vpop.f32.mrb[25].mxu0 }
 0x1cd   :  { %784 = vmatpush3.bf16.xpose.msra.mxu1 %v574_v37  ;;  %v527_v56 = vadd.f32 %v661_v63, %v526_v55  ;;  %v776_v57 = vpop.f32.mrb[26].mxu0 }
 0x1ce   :  { %v567_v58 = vmax.f32 %v535_v54, 0.0  ;;  %785 = vmatprep.subr.bf16.mxu1 %v857_v22  ;;  %v538_v59 = vadd.f32 %v776_v57, %v661_v63  ;;  %v529_v60 = vpop.f32.mrb[27].mxu0 }
 0x1cf   :  { %v565_v61 = vmax.f32 %v527_v56, 0.0  ;;  %v530_v62 = vadd.f32 %v661_v63, %v529_v60 }
 0x1d0   :  { %v568_v0 = vmax.f32 %v538_v59, 0.0 }
 0x1d1   :  { %v566_v1 = vmax.f32 %v530_v62, 0.0 }
 0x1d2   :  { %v578_v2 = vpack.c.bf16 %v568_v0, %v567_v58 }
 0x1d3   :  { %v577_v3 = vpack.c.bf16 %v566_v1, %v565_v61  ;;  %v779_v4 = vpop.f32.mrb[28].mxu0 }
 0x1d4   :  { %v551_v5 = vadd.f32 %v779_v4, %v661_v63  ;;  %v542_v6 = vpop.f32.mrb[29].mxu0 }
 0x1d5   :  { %786 = vmatpush3.bf16.xpose.msra.mxu1 %v575_v52  ;;  %v543_v7 = vadd.f32 %v661_v63, %v542_v6  ;;  %v780_v8 = vpop.f32.mrb[30].mxu0 }
 0x1d6   :  { %787 = vmatprep.subr.bf16.mxu1 %v857_v22  ;;  %v571_v9 = vmax.f32 %v551_v5, 0.0  ;;  %v554_v10 = vadd.f32 %v780_v8, %v661_v63  ;;  %v545_v11 = vpop.f32.mrb[31].mxu0 }
 0x1d7   :  { %v569_v12 = vmax.f32 %v543_v7, 0.0  ;;  %v546_v13 = vadd.f32 %v661_v63, %v545_v11 }
 0x1d8   :  { %v572_v14 = vmax.f32 %v554_v10, 0.0 }
 0x1d9   :  { %v570_v15 = vmax.f32 %v546_v13, 0.0 }
 0x1da   :  { %v580_v16 = vpack.c.bf16 %v572_v14, %v571_v9 }
 0x1db   :  { %v579_v17 = vpack.c.bf16 %v570_v15, %v569_v12 }
 0x1dd   :  { %788 = vmatpush3.bf16.xpose.msra.mxu1 %v576_v51 }
 0x1de   :  { %789 = vmatprep.subr.bf16.mxu1 %v857_v22 }
 0x1e5   :  { %790 = vmatpush3.bf16.xpose.msra.mxu1 %v577_v3 }
 0x1e6   :  { %791 = vmatprep.subr.bf16.mxu1 %v857_v22 }
 0x1ed   :  { %792 = vmatpush3.bf16.xpose.msra.mxu1 %v578_v2 }
 0x1ee   :  { %793 = vmatprep.subr.bf16.mxu1 %v857_v22 }
 0x1f5   :  { %794 = vmatpush3.bf16.xpose.msra.mxu1 %v579_v17 }
 0x1f6   :  { %795 = vmatprep.subr.bf16.mxu1 %v857_v22 }
 0x1fd   :  { %796 = vmatpush3.bf16.xpose.msra.mxu1 %v580_v16 }
 0x204   :  { %798 = vmatmul.mubr.bf16.vlgmr.msra.gmra.mrb[16].mxu1 %v581_v18 }
 0x2d7   :  { %v622_v20 = vpop.f32.mrb[16].mxu1 }
 0x2d8   :  { %v623_v21 = vadd.f32 %v622_v20, %v586_v19  ;;  %v799_v23 = vpop.f32.mrb[17].mxu1 }
 0x2d9   :  { %v625_v24 = vpop.f32.mrb[18].mxu1 }
 0x2da   :  { %628 = vst [vmem:[#allocation2] sm:$0xff] %v623_v21  ;;  %v800_v63 = vpop.f32.mrb[19].mxu1 }
 0x2db   :  { %844 = shalt.err (!%p841_p4)
}
 0x2dc   :  { %s845_s28 = scalar_lea.hbm %s1113_s9, 128 }
 0x2dd   :  { %p846_p5 = scmp.ne.s32.totalorder %s1113_s9, %s845_s28  ;;  %p849_p6 = scmp.lt.u32.totalorder %s845_s28, %s1113_s9 }
 0x2df   :  { %p851_p7 = pnand %p849_p6, %p846_p5 }
 0x2e1   :  { %854 = shalt.err (!%p851_p7)
}
 0x2e2   :  { %638 = dma.vmem_to_hbm [thread:$0]  %s636_s25, 128, %s1113_s9, [#allocation3]  }
 0x2e3   :  { %855 = dma.done.wait [#allocation3], 128  }
 0x2e4   :  { %856 = vsyncadd [#allocation3], 4294967168 }
 0x2e5   :  { %642 = vsyncpa [#allocation3], 1 }

</bundles_post_ra>
